<compile_context>
chip_gen: v7x
topology: tpu7x:2x2x1
jax: 0.10.0
libtpu: 0.0.40
codegen_flags: <defaults>
</compile_context>

<pallas_src>
import functools

import jax
import jax.numpy as jnp
from jax.experimental import pallas as pl
from jax.experimental.pallas import tpu as pltpu

LANE = 128       # lane width: feature dims & N padded to multiples of this
MAX_TILE = 512   # max adjacency row/col tile (512 ~ 85% of HBM roofline)


def _round_up(x, m):
    return ((x + m - 1) // m) * m


def _pick_tile(n_pad, max_tile, prefer_multi):
    """Largest multiple of 128 that divides n_pad and is <= max_tile.
    If prefer_multi, prefer a tile giving >= 2 grid steps (v7x megacore)."""
    cands = [t for t in range(LANE, min(n_pad, max_tile) + 1, LANE)
             if n_pad % t == 0]
    if prefer_multi:
        multi = [t for t in cands if n_pad // t >= 2]
        if multi:
            return max(multi)
    return max(cands)


def _a_stream_kernel(a_ref, b_ref, dinv_ref, bias_ref, *rest, fuse_relu_w2):
    """One grid step of  acc += (A+I)[row_tile, k_tile] @ B[k_tile, :].

    a_ref    : (tm, tk)      int8 tile of the raw (A + I) adjacency
    b_ref    : (n_pad, f_b)  bf16, VMEM-resident (fetched once), dinv-prescaled
    dinv_ref : (tm, 1)       f32 row scaling D^{-1/2} (0 on padded rows)
    bias_ref : (1, f_b)      f32
    fuse_relu_w2: layer-1 variant -> rest = (w2_ref, o_ref, acc_ref); finalize
      emits  dinv * (relu(dinv*acc + b1) @ W2)  (i.e. layer-2's streamed
      operand).  Otherwise rest = (o_ref, acc_ref); finalize emits dinv*acc+b.
    """
    if fuse_relu_w2:
        w2_ref, o_ref, acc_ref = rest
    else:
        o_ref, acc_ref = rest

    k = pl.program_id(1)
    tk = a_ref.shape[1]

    @pl.when(k == 0)
    def _():
        acc_ref[...] = jnp.zeros_like(acc_ref)

    # int8 -> bf16 upcast (VPU work, hidden under the A-tile DMA); bf16 MXU dot.
    a = a_ref[...].astype(jnp.bfloat16)
    start = pl.multiple_of(k * tk, tk)
    acc_ref[...] += jnp.dot(a, b_ref[pl.ds(start, tk), :],
                            preferred_element_type=jnp.float32)

    @pl.when(k == pl.num_programs(1) - 1)
    def _():
        res = dinv_ref[...] * acc_ref[...] + bias_ref[...]
        if fuse_relu_w2:
            h = jnp.maximum(res, 0.0).astype(jnp.bfloat16)
            hw2 = jnp.dot(h, w2_ref[...], preferred_element_type=jnp.float32)
            # Pre-scale by dinv so this output is directly layer-2's operand;
            # dinv == 0 on padded rows also masks the relu(b1) artifact there.
            res = dinv_ref[...] * hw2
        o_ref[...] = res.astype(o_ref.dtype)


def _a_stream(adj_i8, b_mat, dinv_col, bias, *, tm, tk, w2=None,
              out_dtype=jnp.float32):
    """dinv * ((A+I) @ b_mat) + bias, optionally fused with relu and @W2."""
    n_pad = adj_i8.shape[0]
    f_b = b_mat.shape[1]
    fuse = w2 is not None
    f_o = w2.shape[1] if fuse else f_b

    kernel = functools.partial(_a_stream_kernel, fuse_relu_w2=fuse)

    in_specs = [
        pl.BlockSpec((tm, tk), lambda i, kk: (i, kk)),      # A tile (int8)
        pl.BlockSpec((n_pad, f_b), lambda i, kk: (0, 0)),   # B: VMEM-resident
        pl.BlockSpec((tm, 1), lambda i, kk: (i, 0)),        # dinv rows
        pl.BlockSpec((1, f_b), lambda i, kk: (0, 0)),       # bias
    ]
    operands = [adj_i8, b_mat, dinv_col, bias]
    if fuse:
        in_specs.append(pl.BlockSpec((f_b, f_o), lambda i, kk: (0, 0)))  # W2
        operands.append(w2)

    return pl.pallas_call(
        kernel,
        out_shape=jax.ShapeDtypeStruct((n_pad, f_o), out_dtype),
        grid_spec=pltpu.PrefetchScalarGridSpec(
            num_scalar_prefetch=0,
            grid=(n_pad // tm, n_pad // tk),
            in_specs=in_specs,
            out_specs=pl.BlockSpec((tm, f_o), lambda i, kk: (i, 0)),
            scratch_shapes=[pltpu.VMEM((tm, f_b), jnp.float32)],
        ),
        compiler_params=pltpu.CompilerParams(
            dimension_semantics=("parallel", "arbitrary"),
        ),
    )(*operands)


def gcn_forward(x, edge_index, w1, b1, w2, b2):
    """x: [N, F_in] f32, edge_index: [2, E] int32, weights stored [in, out]."""
    n, f_in = x.shape
    f_hid = w1.shape[1]
    f_out = w2.shape[1]

    n_pad = _round_up(n, LANE)
    f_hid_p = _round_up(f_hid, LANE)
    f_out_p = _round_up(f_out, LANE)

    # ---- glue: raw (A + I) built directly in its streamed int8 storage ----
    src, dst = edge_index[0], edge_index[1]
    loop = jnp.arange(n, dtype=edge_index.dtype)
    srcl = jnp.concatenate([src, loop])
    dstl = jnp.concatenate([dst, loop])
    adj = jnp.zeros((n_pad, n_pad), jnp.int8).at[dstl, srcl].add(jnp.int8(1))

    # degree / D^{-1/2} from the edge list (O(E), no N^2 pass); padded rows = 0
    deg = jnp.zeros((n,), jnp.float32).at[dstl].add(1.0)
    dinv = jnp.where(deg > 0, jax.lax.rsqrt(deg), 0.0)
    dinv_col = jnp.zeros((n_pad, 1), jnp.float32).at[:n, 0].set(dinv)

    # Tiny projection X @ W1 (launch-overhead dominated -> plain XLA dot),
    # pre-scaled by dinv so the kernels can stream the raw integer adjacency.
    xw1 = dinv[:, None] * jnp.dot(x, w1, preferred_element_type=jnp.float32)
    xw1_p = jnp.zeros((n_pad, f_hid_p), jnp.bfloat16)
    xw1_p = xw1_p.at[:n, :f_hid].set(xw1.astype(jnp.bfloat16))

    w2_p = jnp.zeros((f_hid_p, f_out_p), jnp.bfloat16)
    w2_p = w2_p.at[:f_hid, :f_out].set(w2.astype(jnp.bfloat16))
    b1_p = jnp.zeros((1, f_hid_p), jnp.float32).at[0, :f_hid].set(
        b1.astype(jnp.float32))
    b2_p = jnp.zeros((1, f_out_p), jnp.float32).at[0, :f_out].set(
        b2.astype(jnp.float32))

    tm = _pick_tile(n_pad, MAX_TILE, prefer_multi=True)   # >=2 row tiles if possible
    tk = _pick_tile(n_pad, MAX_TILE, prefer_multi=False)

    # layer 1 (+ fused relu and H @ W2): emits dinv * (relu(A_hat @ XW1 + b1) @ W2)
    hw2 = _a_stream(adj, xw1_p, dinv_col, b1_p, tm=tm, tk=tk, w2=w2_p,
                    out_dtype=jnp.bfloat16)
    # layer 2: OUT = dinv * ((A+I) @ hw2) + b2  ==  A_hat @ (H @ W2) + b2
    out = _a_stream(adj, hw2, dinv_col, b2_p, tm=tm, tk=tk, w2=None,
                    out_dtype=jnp.float32)
    return out[:n, :f_out]


if __name__ == "__main__":
    # Small deterministic problem: 16 nodes, input_dim=8, hidden_dim=32, output_dim=4
    N, F_IN, F_HID, F_OUT = 16, 8, 32, 4

    key = jax.random.PRNGKey(0)
    kx, kw1, kb1, kw2, kb2 = jax.random.split(key, 5)

    x = jax.random.normal(kx, (N, F_IN), dtype=jnp.float32)

    # ring graph (both directions) as deterministic edge_index [2, E]
    idx = jnp.arange(N, dtype=jnp.int32)
    src = jnp.concatenate([idx, (idx + 1) % N])
    dst = jnp.concatenate([(idx + 1) % N, idx])
    edge_index = jnp.stack([src, dst], axis=0)

    # deterministic parameter init (Glorot-ish), weights stored as [in, out]
    w1 = jax.random.normal(kw1, (F_IN, F_HID), dtype=jnp.float32) * (1.0 / jnp.sqrt(F_IN))
    b1 = jax.random.normal(kb1, (F_HID,), dtype=jnp.float32) * 0.01
    w2 = jax.random.normal(kw2, (F_HID, F_OUT), dtype=jnp.float32) * (1.0 / jnp.sqrt(F_HID))
    b2 = jax.random.normal(kb2, (F_OUT,), dtype=jnp.float32) * 0.01

    out = jax.jit(gcn_forward)(x, edge_index, w1, b1, w2, b2)
    out = jax.block_until_ready(out)

    # plain f32 reference (PyG gcn_norm semantics)
    loop = jnp.arange(N, dtype=jnp.int32)
    s = jnp.concatenate([src, loop])
    d = jnp.concatenate([dst, loop])
    A = jnp.zeros((N, N), jnp.float32).at[d, s].add(1.0)
    deg = A.sum(axis=1)
    dinv = jnp.where(deg > 0, jax.lax.rsqrt(deg), 0.0)
    A_hat = A * dinv[:, None] * dinv[None, :]
    h_ref = jnp.maximum(A_hat @ (x @ w1) + b1, 0.0)
    out_ref = A_hat @ (h_ref @ w2) + b2

    assert out.shape == (N, F_OUT)
    assert jnp.allclose(out, out_ref, atol=5e-2, rtol=5e-2), "mismatch vs reference"

    print("KERNEL_OK")
</pallas_src>

<mosaic_0001>
module attributes {stable_mosaic.version = 11 : i64} {
  func.func private @main(%arg0: i32) attributes {dimension_semantics = [#tpu.dimension_semantics<core_parallel>], iteration_bounds = array<i64: 2>, tpu.core_type = #tpu.core_type<sc_scalar_subcore>, window_params = []} {
    return
  }
}

module attributes {stable_mosaic.version = 11 : i64} {
  func.func private @main(%arg0: i32) attributes {dimension_semantics = [#tpu.dimension_semantics<core_parallel>], iteration_bounds = array<i64: 2>, tpu.core_type = #tpu.core_type<sc_scalar_subcore>, window_params = []} {
    return
  }
}

module attributes {stable_mosaic.version = 11 : i64} {
  func.func @_a_stream_kernel(%arg0: i32, %arg1: i32, %arg2: memref<128x128xi8, #tpu.memory_space<vmem>>, %arg3: memref<128x128xbf16, #tpu.memory_space<vmem>>, %arg4: memref<128x1xf32, #tpu.memory_space<vmem>>, %arg5: memref<1x128xf32, #tpu.memory_space<vmem>>, %arg6: memref<128x128xf32, #tpu.memory_space<vmem>>, %arg7: memref<128x128xf32, #tpu.memory_space<vmem>>) attributes {dimension_semantics = [#tpu.dimension_semantics<parallel>, #tpu.dimension_semantics<arbitrary>], iteration_bounds = array<i64: 1, 1>, scalar_prefetch = 0 : i64, scratch_operands = 1 : i64, tpu.core_type = #tpu.core_type<tc>, window_params = [{transform_indices = @transform_0, window_bounds = array<i64: 128, 128>}, {pipeline_mode = #tpu.pipeline_mode<synchronous>, transform_indices = @transform_1, window_bounds = array<i64: 128, 128>}, {transform_indices = @transform_2, window_bounds = array<i64: 128, 1>}, {pipeline_mode = #tpu.pipeline_mode<synchronous>, transform_indices = @transform_3, window_bounds = array<i64: 1, 128>}, {transform_indices = @transform_4, window_bounds = array<i64: 128, 128>}]} {
    %c0_i32 = arith.constant 0 : i32
    %0 = arith.cmpi eq, %arg1, %c0_i32 : i32
    %1 = arith.extui %0 : i1 to i32
    %c0_i32_0 = arith.constant 0 : i32
    %2 = arith.cmpi ne, %1, %c0_i32_0 : i32
    scf.if %2 {
      %cst_9 = arith.constant 0.000000e+00 : f32
      %16 = vector.broadcast %cst_9 : f32 to vector<128x128xf32>
      %c0_10 = arith.constant 0 : index
      %c0_11 = arith.constant 0 : index
      %17 = vector.load %arg7[%c0_10, %c0_11] : memref<128x128xf32, #tpu.memory_space<vmem>>, vector<128x128xf32>
      tpu.vector_store %arg7[%c0_10, %c0_11], %16 {strides = array<i32>} : memref<128x128xf32, #tpu.memory_space<vmem>>, vector<128x128xf32>,
    } else {
    }
    %c0 = arith.constant 0 : index
    %c0_1 = arith.constant 0 : index
    %3 = vector.load %arg2[%c0, %c0_1] : memref<128x128xi8, #tpu.memory_space<vmem>>, vector<128x128xi8>
    %4 = arith.sitofp %3 : vector<128x128xi8> to vector<128x128xbf16>
    %c128_i32 = arith.constant 128 : i32
    %5 = arith.muli %arg1, %c128_i32 : i32
    %6 = tpu.assume_multiple %5, 128 : i32
    %c0_2 = arith.constant 0 : index
    %c0_3 = arith.constant 0 : index
    %7 = vector.load %arg7[%c0_2, %c0_3] : memref<128x128xf32, #tpu.memory_space<vmem>>, vector<128x128xf32>
    %8 = arith.index_cast %6 : i32 to index
    %c0_4 = arith.constant 0 : index
    %9 = vector.load %arg3[%8, %c0_4] : memref<128x128xbf16, #tpu.memory_space<vmem>>, vector<128x128xbf16>
    %cst = arith.constant dense<0.000000e+00> : vector<128x128xf32>
    %10 = tpu.matmul %4, %9, %cst {dimension_numbers = #tpu.dot_dimension_numbers<[1], [0], [0], [1], [0, 0, 1, 1], [], []>} : vector<128x128xbf16>, vector<128x128xbf16>, vector<128x128xf32> -> vector<128x128xf32>
    %11 = arith.addf %7, %10 : vector<128x128xf32>
    %c0_5 = arith.constant 0 : index
    %c0_6 = arith.constant 0 : index
    %12 = vector.load %arg7[%c0_5, %c0_6] : memref<128x128xf32, #tpu.memory_space<vmem>>, vector<128x128xf32>
    tpu.vector_store %arg7[%c0_5, %c0_6], %11 {strides = array<i32>} : memref<128x128xf32, #tpu.memory_space<vmem>>, vector<128x128xf32>,
    %c0_i32_7 = arith.constant 0 : i32
    %13 = arith.cmpi eq, %arg1, %c0_i32_7 : i32
    %14 = arith.extui %13 : i1 to i32
    %c0_i32_8 = arith.constant 0 : i32
    %15 = arith.cmpi ne, %14, %c0_i32_8 : i32
    scf.if %15 {
      %c0_9 = arith.constant 0 : index
      %c0_10 = arith.constant 0 : index
      %16 = vector.load %arg4[%c0_9, %c0_10] : memref<128x1xf32, #tpu.memory_space<vmem>>, vector<128x1xf32>
      %c0_11 = arith.constant 0 : index
      %c0_12 = arith.constant 0 : index
      %17 = vector.load %arg7[%c0_11, %c0_12] : memref<128x128xf32, #tpu.memory_space<vmem>>, vector<128x128xf32>
      %18 = vector.broadcast %16 : vector<128x1xf32> to vector<128x128xf32>
      %19 = arith.mulf %18, %17 : vector<128x128xf32>
      %c0_13 = arith.constant 0 : index
      %c0_14 = arith.constant 0 : index
      %20 = vector.load %arg5[%c0_13, %c0_14] : memref<1x128xf32, #tpu.memory_space<vmem>>, vector<1x128xf32>
      %21 = vector.broadcast %20 : vector<1x128xf32> to vector<128x128xf32>
      %22 = arith.addf %19, %21 : vector<128x128xf32>
      %c0_15 = arith.constant 0 : index
      %c0_16 = arith.constant 0 : index
      %23 = vector.load %arg6[%c0_15, %c0_16] : memref<128x128xf32, #tpu.memory_space<vmem>>, vector<128x128xf32>
      tpu.vector_store %arg6[%c0_15, %c0_16], %22 {strides = array<i32>} : memref<128x128xf32, #tpu.memory_space<vmem>>, vector<128x128xf32>,
    } else {
    }
    return
  }
  func.func @transform_0(%arg0: i32, %arg1: i32) -> (i32, i32) {
    %c0_i32 = arith.constant 0 : i32
    return %arg0, %arg1 : i32, i32
  }
  func.func @transform_1(%arg0: i32, %arg1: i32) -> (i32, i32) {
    %c0_i32 = arith.constant 0 : i32
    %c0_i32_0 = arith.constant 0 : i32
    %c0_i32_1 = arith.constant 0 : i32
    return %c0_i32, %c0_i32_0 : i32, i32
  }
  func.func @transform_2(%arg0: i32, %arg1: i32) -> (i32, i32) {
    %c0_i32 = arith.constant 0 : i32
    %c0_i32_0 = arith.constant 0 : i32
    return %arg0, %c0_i32 : i32, i32
  }
  func.func @transform_3(%arg0: i32, %arg1: i32) -> (i32, i32) {
    %c0_i32 = arith.constant 0 : i32
    %c0_i32_0 = arith.constant 0 : i32
    %c0_i32_1 = arith.constant 0 : i32
    return %c0_i32, %c0_i32_0 : i32, i32
  }
  func.func @transform_4(%arg0: i32, %arg1: i32) -> (i32, i32) {
    %c0_i32 = arith.constant 0 : i32
    %c0_i32_0 = arith.constant 0 : i32
    return %arg0, %c0_i32 : i32, i32
  }
}

module attributes {stable_mosaic.version = 11 : i64} {
  func.func @_a_stream_kernel(%arg0: i32, %arg1: i32, %arg2: memref<128x128xi8, #tpu.memory_space<vmem>>, %arg3: memref<128x128xbf16, #tpu.memory_space<vmem>>, %arg4: memref<128x1xf32, #tpu.memory_space<vmem>>, %arg5: memref<1x128xf32, #tpu.memory_space<vmem>>, %arg6: memref<128x128xbf16, #tpu.memory_space<vmem>>, %arg7: memref<128x128xbf16, #tpu.memory_space<vmem>>, %arg8: memref<128x128xf32, #tpu.memory_space<vmem>>) attributes {dimension_semantics = [#tpu.dimension_semantics<parallel>, #tpu.dimension_semantics<arbitrary>], iteration_bounds = array<i64: 1, 1>, scalar_prefetch = 0 : i64, scratch_operands = 1 : i64, tpu.core_type = #tpu.core_type<tc>, window_params = [{transform_indices = @transform_0, window_bounds = array<i64: 128, 128>}, {pipeline_mode = #tpu.pipeline_mode<synchronous>, transform_indices = @transform_1, window_bounds = array<i64: 128, 128>}, {transform_indices = @transform_2, window_bounds = array<i64: 128, 1>}, {pipeline_mode = #tpu.pipeline_mode<synchronous>, transform_indices = @transform_3, window_bounds = array<i64: 1, 128>}, {pipeline_mode = #tpu.pipeline_mode<synchronous>, transform_indices = @transform_4, window_bounds = array<i64: 128, 128>}, {transform_indices = @transform_5, window_bounds = array<i64: 128, 128>}]} {
    %c0_i32 = arith.constant 0 : i32
    %0 = arith.cmpi eq, %arg1, %c0_i32 : i32
    %1 = arith.extui %0 : i1 to i32
    %c0_i32_0 = arith.constant 0 : i32
    %2 = arith.cmpi ne, %1, %c0_i32_0 : i32
    scf.if %2 {
      %cst_9 = arith.constant 0.000000e+00 : f32
      %16 = vector.broadcast %cst_9 : f32 to vector<128x128xf32>
      %c0_10 = arith.constant 0 : index
      %c0_11 = arith.constant 0 : index
      %17 = vector.load %arg8[%c0_10, %c0_11] : memref<128x128xf32, #tpu.memory_space<vmem>>, vector<128x128xf32>
      tpu.vector_store %arg8[%c0_10, %c0_11], %16 {strides = array<i32>} : memref<128x128xf32, #tpu.memory_space<vmem>>, vector<128x128xf32>,
    } else {
    }
    %c0 = arith.constant 0 : index
    %c0_1 = arith.constant 0 : index
    %3 = vector.load %arg2[%c0, %c0_1] : memref<128x128xi8, #tpu.memory_space<vmem>>, vector<128x128xi8>
    %4 = arith.sitofp %3 : vector<128x128xi8> to vector<128x128xbf16>
    %c128_i32 = arith.constant 128 : i32
    %5 = arith.muli %arg1, %c128_i32 : i32
    %6 = tpu.assume_multiple %5, 128 : i32
    %c0_2 = arith.constant 0 : index
    %c0_3 = arith.constant 0 : index
    %7 = vector.load %arg8[%c0_2, %c0_3] : memref<128x128xf32, #tpu.memory_space<vmem>>, vector<128x128xf32>
    %8 = arith.index_cast %6 : i32 to index
    %c0_4 = arith.constant 0 : index
    %9 = vector.load %arg3[%8, %c0_4] : memref<128x128xbf16, #tpu.memory_space<vmem>>, vector<128x128xbf16>
    %cst = arith.constant dense<0.000000e+00> : vector<128x128xf32>
    %10 = tpu.matmul %4, %9, %cst {dimension_numbers = #tpu.dot_dimension_numbers<[1], [0], [0], [1], [0, 0, 1, 1], [], []>} : vector<128x128xbf16>, vector<128x128xbf16>, vector<128x128xf32> -> vector<128x128xf32>
    %11 = arith.addf %7, %10 : vector<128x128xf32>
    %c0_5 = arith.constant 0 : index
    %c0_6 = arith.constant 0 : index
    %12 = vector.load %arg8[%c0_5, %c0_6] : memref<128x128xf32, #tpu.memory_space<vmem>>, vector<128x128xf32>
    tpu.vector_store %arg8[%c0_5, %c0_6], %11 {strides = array<i32>} : memref<128x128xf32, #tpu.memory_space<vmem>>, vector<128x128xf32>,
    %c0_i32_7 = arith.constant 0 : i32
    %13 = arith.cmpi eq, %arg1, %c0_i32_7 : i32
    %14 = arith.extui %13 : i1 to i32
    %c0_i32_8 = arith.constant 0 : i32
    %15 = arith.cmpi ne, %14, %c0_i32_8 : i32
    scf.if %15 {
      %c0_9 = arith.constant 0 : index
      %c0_10 = arith.constant 0 : index
      %16 = vector.load %arg4[%c0_9, %c0_10] : memref<128x1xf32, #tpu.memory_space<vmem>>, vector<128x1xf32>
      %c0_11 = arith.constant 0 : index
      %c0_12 = arith.constant 0 : index
      %17 = vector.load %arg8[%c0_11, %c0_12] : memref<128x128xf32, #tpu.memory_space<vmem>>, vector<128x128xf32>
      %18 = vector.broadcast %16 : vector<128x1xf32> to vector<128x128xf32>
      %19 = arith.mulf %18, %17 : vector<128x128xf32>
      %c0_13 = arith.constant 0 : index
      %c0_14 = arith.constant 0 : index
      %20 = vector.load %arg5[%c0_13, %c0_14] : memref<1x128xf32, #tpu.memory_space<vmem>>, vector<1x128xf32>
      %21 = vector.broadcast %20 : vector<1x128xf32> to vector<128x128xf32>
      %22 = arith.addf %19, %21 : vector<128x128xf32>
      %cst_15 = arith.constant 0.000000e+00 : f32
      %23 = vector.broadcast %cst_15 : f32 to vector<128x128xf32>
      %24 = arith.maximumf %22, %23 : vector<128x128xf32>
      %25 = arith.truncf %24 : vector<128x128xf32> to vector<128x128xbf16>
      %c0_16 = arith.constant 0 : index
      %c0_17 = arith.constant 0 : index
      %26 = vector.load %arg6[%c0_16, %c0_17] : memref<128x128xbf16, #tpu.memory_space<vmem>>, vector<128x128xbf16>
      %cst_18 = arith.constant dense<0.000000e+00> : vector<128x128xf32>
      %27 = tpu.matmul %25, %26, %cst_18 {dimension_numbers = #tpu.dot_dimension_numbers<[1], [0], [0], [1], [0, 0, 1, 1], [], []>} : vector<128x128xbf16>, vector<128x128xbf16>, vector<128x128xf32> -> vector<128x128xf32>
      %c0_19 = arith.constant 0 : index
      %c0_20 = arith.constant 0 : index
      %28 = vector.load %arg4[%c0_19, %c0_20] : memref<128x1xf32, #tpu.memory_space<vmem>>, vector<128x1xf32>
      %29 = vector.broadcast %28 : vector<128x1xf32> to vector<128x128xf32>
      %30 = arith.mulf %29, %27 : vector<128x128xf32>
      %31 = arith.truncf %30 : vector<128x128xf32> to vector<128x128xbf16>
      %c0_21 = arith.constant 0 : index
      %c0_22 = arith.constant 0 : index
      %32 = vector.load %arg7[%c0_21, %c0_22] : memref<128x128xbf16, #tpu.memory_space<vmem>>, vector<128x128xbf16>
      tpu.vector_store %arg7[%c0_21, %c0_22], %31 {strides = array<i32>} : memref<128x128xbf16, #tpu.memory_space<vmem>>, vector<128x128xbf16>,
    } else {
    }
    return
  }
  func.func @transform_0(%arg0: i32, %arg1: i32) -> (i32, i32) {
    %c0_i32 = arith.constant 0 : i32
    return %arg0, %arg1 : i32, i32
  }
  func.func @transform_1(%arg0: i32, %arg1: i32) -> (i32, i32) {
    %c0_i32 = arith.constant 0 : i32
    %c0_i32_0 = arith.constant 0 : i32
    %c0_i32_1 = arith.constant 0 : i32
    return %c0_i32, %c0_i32_0 : i32, i32
  }
  func.func @transform_2(%arg0: i32, %arg1: i32) -> (i32, i32) {
    %c0_i32 = arith.constant 0 : i32
    %c0_i32_0 = arith.constant 0 : i32
    return %arg0, %c0_i32 : i32, i32
  }
  func.func @transform_3(%arg0: i32, %arg1: i32) -> (i32, i32) {
    %c0_i32 = arith.constant 0 : i32
    %c0_i32_0 = arith.constant 0 : i32
    %c0_i32_1 = arith.constant 0 : i32
    return %c0_i32, %c0_i32_0 : i32, i32
  }
  func.func @transform_4(%arg0: i32, %arg1: i32) -> (i32, i32) {
    %c0_i32 = arith.constant 0 : i32
    %c0_i32_0 = arith.constant 0 : i32
    %c0_i32_1 = arith.constant 0 : i32
    return %c0_i32, %c0_i32_0 : i32, i32
  }
  func.func @transform_5(%arg0: i32, %arg1: i32) -> (i32, i32) {
    %c0_i32 = arith.constant 0 : i32
    %c0_i32_0 = arith.constant 0 : i32
    return %arg0, %c0_i32 : i32, i32
  }
}

</mosaic_0001>

<bundles_post_ra>
// kernel: gcn_forward.3
= control target key start
LH: loop header
LB: loop body
LE: loop exit
PB: predicated region body
PF: predicated region fallthrough
CT: control target
= control target key end

     0   :  { %v600_v1 = vmov 0   ;;  %s800_s1 = inlined_call_operand.vmem [shape: bf16[128,128], index: 1, kind: input, shape index: {}]   ;;  %s801_s0 = inlined_call_operand.vmem [shape: s8[128,128], index: 0, kind: input, shape index: {}]   ;;  %s802_s2 = inlined_call_operand.vmem [shape: f32[128,1], index: 2, kind: input, shape index: {}]   ;;  %s803_s3 = inlined_call_operand.vmem [shape: f32[1,128], index: 3, kind: input, shape index: {}]   ;;  %s804_s4 = inlined_call_operand.vmem [shape: f32[128,128], index: 4, kind: output, shape index: {}]  }
   0x1   :  { %v592_v0 = vld [vmem:[%s800_s1] sm:$0xff]   ;;  %591 = vset.pattern.permute.xlu1 %v600_v1  ;;  %590 = vset.pattern.permute.xlu0 %v600_v1  ;;  %v593_v2 = vld [vmem:[%s800_s1 + $0x8] sm:$0xff]   ;;  %v594_v3 = vld [vmem:[%s800_s1 + $0x10] sm:$0xff]  }
   0x2   :  { %541 = vmatprep.subr.bf16.mxu0 %v592_v0  ;;  %573 = vmatprep.subr.bf16.mxu1 %v592_v0  ;;  %v595_v4 = vld [vmem:[%s800_s1 + $0x18] sm:$0xff]   ;;  %v38_v5 = vld [vmem:[%s801_s0] sm:$0x3]  ;;  %v39_v6 = vld [vmem:[%s801_s0 + $0x2] sm:$0x3] }
   0x3   :  { %542 = vmatpush3.bf16.msra.mxu0 %v592_v0  ;;  %581 = vmatpush3.bf16.msra.mxu1 %v592_v0  ;;  %v46_v7 = vld [vmem:[%s801_s0 + $0x10] sm:$0x3]  ;;  %v54_v8 = vunpack.c.l.s8.bf16 %v38_v5  ;;  %v55_v9 = vunpack.c.l.s8.bf16 %v39_v6  ;;  %v47_v10 = vld [vmem:[%s801_s0 + $0x12] sm:$0x3]  ;;  %v596_v14 = vld [vmem:[%s800_s1 + $0x20] sm:$0xff]  }
   0x4   :  { %543 = vmatprep.subr.bf16.mxu0 %v593_v2  ;;  %574 = vmatprep.subr.bf16.mxu1 %v593_v2  ;;  %v62_v11 = vunpack.c.l.s8.bf16 %v46_v7  ;;  %v63_v12 = vunpack.c.l.s8.bf16 %v47_v10  ;;  %v337_v16 = vld [vmem:[%s802_s2 + $0x10] sm:$0xff]  ;;  %v335_v17 = vld [vmem:[%s802_s2] sm:$0xff]  ;;  %v338_v18 = vld [vmem:[%s802_s2 + $0x18] sm:$0xff] }
   0x5   :  { %v508_v13 = vcombine.low %v54_v8, %v55_v9  ;;  %379 = vperm.xlu1 %591, %v337_v16   ;;  %v597_v19 = vld [vmem:[%s800_s1 + $0x28] sm:$0xff]   ;;  %369 = vperm.xlu0 %590, %v335_v17   ;;  %v598_v22 = vld [vmem:[%s800_s1 + $0x30] sm:$0xff]   ;;  %v40_v23 = vld [vmem:[%s801_s0 + $0x4] sm:$0x3] }
   0x6   :  { %v512_v15 = vcombine.low %v62_v11, %v63_v12  ;;  %v336_v20 = vld [vmem:[%s802_s2 + $0x8] sm:$0xff]  ;;  %v599_v24 = vld [vmem:[%s800_s1 + $0x38] sm:$0xff]   ;;  %v41_v25 = vld [vmem:[%s801_s0 + $0x6] sm:$0x3]  ;;  %v56_v34 = vunpack.c.l.s8.bf16 %v40_v23 }
   0x7   :  { %544 = vmatpush3.bf16.msra.mxu0 %v593_v2  ;;  %582 = vmatpush3.bf16.msra.mxu1 %v593_v2  ;;  %v340_v21 = vld [vmem:[%s802_s2 + $0x28] sm:$0xff]  ;;  %v48_v26 = vld [vmem:[%s801_s0 + $0x14] sm:$0x3]  ;;  %v339_v27 = vld [vmem:[%s802_s2 + $0x20] sm:$0xff]  ;;  %v57_v35 = vunpack.c.l.s8.bf16 %v41_v25 }
   0x8   :  { %545 = vmatprep.subr.bf16.mxu0 %v594_v3  ;;  %575 = vmatprep.subr.bf16.mxu1 %v594_v3  ;;  %v49_v28 = vld [vmem:[%s801_s0 + $0x16] sm:$0x3]  ;;  %v42_v29 = vld [vmem:[%s801_s0 + $0x8] sm:$0x3]  ;;  %v342_v30 = vld [vmem:[%s802_s2 + $0x38] sm:$0xff]  ;;  %v64_v36 = vunpack.c.l.s8.bf16 %v48_v26 }
   0x9   :  { %557 = vmatprep.mubr.bf16.mxu0 %v508_v13  ;;  %565 = vmatprep.mubr.bf16.mxu1 %v512_v15  ;;  %v43_v31 = vld [vmem:[%s801_s0 + $0xa] sm:$0x3]  ;;  %v50_v32 = vld [vmem:[%s801_s0 + $0x18] sm:$0x3]  ;;  %v51_v33 = vld [vmem:[%s801_s0 + $0x1a] sm:$0x3]  ;;  %v65_v37 = vunpack.c.l.s8.bf16 %v49_v28  ;;  %v58_v39 = vunpack.c.l.s8.bf16 %v42_v29  ;;  %v509_v44 = vcombine.low %v56_v34, %v57_v35 }
   0xa   :  { %384 = vperm.xlu1 %591, %v338_v18   ;;  %374 = vperm.xlu0 %590, %v336_v20   ;;  %v341_v38 = vld [vmem:[%s802_s2 + $0x30] sm:$0xff]  ;;  %v59_v40 = vunpack.c.l.s8.bf16 %v43_v31  ;;  %v66_v41 = vunpack.c.l.s8.bf16 %v50_v32  ;;  %v67_v42 = vunpack.c.l.s8.bf16 %v51_v33  ;;  %v344_v43 = vld [vmem:[%s802_s2 + $0x48] sm:$0xff]  ;;  %v343_v47 = vld [vmem:[%s802_s2 + $0x40] sm:$0xff] }
   0xb   :  { %546 = vmatpush3.bf16.msra.mxu0 %v594_v3  ;;  %583 = vmatpush3.bf16.msra.mxu1 %v594_v3  ;;  %v513_v45 = vcombine.low %v64_v36, %v65_v37  ;;  %v44_v46 = vld [vmem:[%s801_s0 + $0xc] sm:$0x3]  ;;  %v45_v50 = vld [vmem:[%s801_s0 + $0xe] sm:$0x3]  ;;  %v52_v51 = vld [vmem:[%s801_s0 + $0x1c] sm:$0x3] }
   0xc   :  { %547 = vmatprep.subr.bf16.mxu0 %v595_v4  ;;  %576 = vmatprep.subr.bf16.mxu1 %v595_v4  ;;  %v510_v48 = vcombine.low %v58_v39, %v59_v40  ;;  %v514_v49 = vcombine.low %v66_v41, %v67_v42  ;;  %v53_v52 = vld [vmem:[%s801_s0 + $0x1e] sm:$0x3]  ;;  %v60_v54 = vunpack.c.l.s8.bf16 %v44_v46  ;;  %v61_v55 = vunpack.c.l.s8.bf16 %v45_v50  ;;  %v345_v58 = vld [vmem:[%s802_s2 + $0x50] sm:$0xff]  ;;  %v348_v59 = vld [vmem:[%s802_s2 + $0x68] sm:$0xff] }
   0xd   :  { %v346_v53 = vld [vmem:[%s802_s2 + $0x58] sm:$0xff]  ;;  %v68_v56 = vunpack.c.l.s8.bf16 %v52_v51  ;;  %v69_v57 = vunpack.c.l.s8.bf16 %v53_v52  ;;  %v347_v62 = vld [vmem:[%s802_s2 + $0x60] sm:$0xff]  ;;  %v349_v0 = vld [vmem:[%s802_s2 + $0x70] sm:$0xff] }
   0xe   :  { %394 = vperm.xlu1 %591, %v340_v21   ;;  %389 = vperm.xlu0 %590, %v339_v27   ;;  %v511_v60 = vcombine.low %v60_v54, %v61_v55  ;;  %v350_v63 = vld [vmem:[%s802_s2 + $0x78] sm:$0xff]  ;;  %v524_v16 = vld [vmem:[%s803_s3] ss:$0 sm:$0xff] }
   0xf   :  { %548 = vmatpush3.bf16.msra.mxu0 %v595_v4  ;;  %584 = vmatpush3.bf16.msra.mxu1 %v595_v4  ;;  %v515_v61 = vcombine.low %v68_v56, %v69_v57 }
  0x10   :  { %549 = vmatprep.subr.bf16.mxu0 %v596_v14  ;;  %577 = vmatprep.subr.bf16.mxu1 %v596_v14 }
  0x12   :  { %404 = vperm.xlu1 %591, %v342_v30   ;;  %399 = vperm.xlu0 %590, %v341_v38  }
  0x13   :  { %550 = vmatpush3.bf16.msra.mxu0 %v596_v14  ;;  %585 = vmatpush3.bf16.msra.mxu1 %v596_v14 }
  0x14   :  { %551 = vmatprep.subr.bf16.mxu0 %v597_v19  ;;  %578 = vmatprep.subr.bf16.mxu1 %v597_v19 }
  0x16   :  { %414 = vperm.xlu1 %591, %v344_v43   ;;  %409 = vperm.xlu0 %590, %v343_v47  }
  0x17   :  { %552 = vmatpush3.bf16.msra.mxu0 %v597_v19  ;;  %586 = vmatpush3.bf16.msra.mxu1 %v597_v19 }
  0x18   :  { %553 = vmatprep.subr.bf16.mxu0 %v598_v22  ;;  %579 = vmatprep.subr.bf16.mxu1 %v598_v22 }
  0x1a   :  { %424 = vperm.xlu1 %591, %v346_v53   ;;  %419 = vperm.xlu0 %590, %v345_v58  }
  0x1b   :  { %554 = vmatpush3.bf16.msra.mxu0 %v598_v22  ;;  %587 = vmatpush3.bf16.msra.mxu1 %v598_v22 }
  0x1c   :  { %555 = vmatprep.subr.bf16.mxu0 %v599_v24  ;;  %580 = vmatprep.subr.bf16.mxu1 %v599_v24 }
  0x1e   :  { %434 = vperm.xlu1 %591, %v348_v59   ;;  %429 = vperm.xlu0 %590, %v347_v62  }
  0x1f   :  { %556 = vmatpush3.bf16.msra.mxu0 %v599_v24  ;;  %588 = vmatpush3.bf16.msra.mxu1 %v599_v24 }
  0x22   :  { %558 = vmatmul.mubr.bf16.vlgmr.msra.gmra.mrb[0].mxu0 %v509_v44  ;;  %566 = vmatmul.mubr.bf16.vlgmr.msra.gmra.mrb[0].mxu1 %v513_v45 }
  0x23   :  { %561 = vmatprep.mubr.bf16.mxu0 %v510_v48  ;;  %569 = vmatprep.mubr.bf16.mxu1 %v514_v49 }
  0x24   :  { %444 = vperm.xlu1 %591, %v350_v63   ;;  %439 = vperm.xlu0 %590, %v349_v0  }
  0x2a   :  { %562 = vmatmul.mubr.bf16.gmra.mrb[4].mxu0 %v511_v60  ;;  %570 = vmatmul.mubr.bf16.gmra.mrb[4].mxu1 %v515_v61 }
  0x84   :  { %v380_v1 = vpop.permute.xlu1 %379  ;;  %v370_v2 = vpop.permute.xlu0 %369 }
  0x89   :  { %v385_v3 = vpop.permute.xlu1 %384  ;;  %v375_v4 = vpop.permute.xlu0 %374 }
  0x8d   :  { %v746_v5 = vpop.permute.xlu1 %394  ;;  %v390_v6 = vpop.permute.xlu0 %389 }
  0x91   :  { %v405_v7 = vpop.permute.xlu1 %404  ;;  %v400_v8 = vpop.permute.xlu0 %399 }
  0x95   :  { %v415_v9 = vpop.permute.xlu1 %414  ;;  %v410_v10 = vpop.permute.xlu0 %409 }
  0x99   :  { %v425_v11 = vpop.permute.xlu1 %424  ;;  %v420_v12 = vpop.permute.xlu0 %419 }
  0x9d   :  { %v435_v13 = vpop.permute.xlu1 %434  ;;  %v430_v14 = vpop.permute.xlu0 %429 }
  0xa3   :  { %v445_v40 = vpop.permute.xlu1 %444  ;;  %v440_v41 = vpop.permute.xlu0 %439 }
  0xf5   :  { %v559_v15 = vpop.f32.mrb[0].mxu0  ;;  %v567_v17 = vpop.f32.mrb[0].mxu1 }
  0xf6   :  { %v449_v18 = vmul.f32 %v559_v15, %v380_v1  ;;  %v457_v19 = vmul.f32 %v567_v17, %v420_v12  ;;  %v237_v20 = vpop.f32.mrb[1].mxu0  ;;  %v269_v21 = vpop.f32.mrb[1].mxu1 }
  0xf7   :  { %v447_v22 = vmul.f32 %v370_v2, %v237_v20  ;;  %v455_v23 = vmul.f32 %v410_v10, %v269_v21  ;;  %v560_v24 = vpop.f32.mrb[2].mxu0  ;;  %v568_v25 = vpop.f32.mrb[2].mxu1 }
  0xf8   :  { %v472_v26 = vadd.f32 %v524_v16, %v449_v18  ;;  %v480_v27 = vadd.f32 %v524_v16, %v457_v19  ;;  %v450_v28 = vmul.f32 %v560_v24, %v385_v3  ;;  %v458_v29 = vmul.f32 %v568_v25, %v425_v11  ;;  %v240_v30 = vpop.f32.mrb[3].mxu0  ;;  %v272_v31 = vpop.f32.mrb[3].mxu1 }
  0xf9   :  { %v470_v32 = vadd.f32 %v524_v16, %v447_v22  ;;  %v478_v33 = vadd.f32 %v524_v16, %v455_v23  ;;  %v448_v34 = vmul.f32 %v375_v4, %v240_v30  ;;  %v456_v35 = vmul.f32 %v415_v9, %v272_v31 }
  0xfa   :  { %488 = vst [vmem:[%s804_s4 + $0x10] sm:$0xff] %v472_v26  ;;  %496 = vst [vmem:[%s804_s4 + $0x50] sm:$0xff] %v480_v27  ;;  %v473_v36 = vadd.f32 %v524_v16, %v450_v28  ;;  %v481_v37 = vadd.f32 %v524_v16, %v458_v29 }
  0xfb   :  { %486 = vst [vmem:[%s804_s4] sm:$0xff] %v470_v32  ;;  %494 = vst [vmem:[%s804_s4 + $0x40] sm:$0xff] %v478_v33  ;;  %v471_v38 = vadd.f32 %v524_v16, %v448_v34  ;;  %v479_v39 = vadd.f32 %v524_v16, %v456_v35 }
  0xfc   :  { %489 = vst [vmem:[%s804_s4 + $0x18] sm:$0xff] %v473_v36  ;;  %497 = vst [vmem:[%s804_s4 + $0x58] sm:$0xff] %v481_v37 }
  0xfd   :  { %487 = vst [vmem:[%s804_s4 + $0x8] sm:$0xff] %v471_v38  ;;  %495 = vst [vmem:[%s804_s4 + $0x48] sm:$0xff] %v479_v39  ;;  %v563_v42 = vpop.f32.mrb[4].mxu0  ;;  %v571_v43 = vpop.f32.mrb[4].mxu1 }
  0xfe   :  { %v453_v44 = vmul.f32 %v563_v42, %v400_v8  ;;  %v461_v45 = vmul.f32 %v571_v43, %v440_v41  ;;  %v253_v46 = vpop.f32.mrb[5].mxu0  ;;  %v285_v47 = vpop.f32.mrb[5].mxu1 }
  0xff   :  { %v451_v48 = vmul.f32 %v390_v6, %v253_v46  ;;  %v459_v49 = vmul.f32 %v430_v14, %v285_v47  ;;  %v564_v50 = vpop.f32.mrb[6].mxu0  ;;  %v572_v51 = vpop.f32.mrb[6].mxu1 }
 0x100   :  { %v476_v52 = vadd.f32 %v524_v16, %v453_v44  ;;  %v484_v53 = vadd.f32 %v524_v16, %v461_v45  ;;  %v454_v54 = vmul.f32 %v564_v50, %v405_v7  ;;  %v462_v55 = vmul.f32 %v572_v51, %v445_v40  ;;  %v256_v56 = vpop.f32.mrb[7].mxu0  ;;  %v288_v57 = vpop.f32.mrb[7].mxu1 }
 0x101   :  { %v474_v58 = vadd.f32 %v524_v16, %v451_v48  ;;  %v482_v59 = vadd.f32 %v524_v16, %v459_v49  ;;  %v452_v60 = vmul.f32 %v746_v5, %v256_v56  ;;  %v460_v61 = vmul.f32 %v435_v13, %v288_v57 }
 0x102   :  { %492 = vst [vmem:[%s804_s4 + $0x30] sm:$0xff] %v476_v52  ;;  %500 = vst [vmem:[%s804_s4 + $0x70] sm:$0xff] %v484_v53  ;;  %v477_v62 = vadd.f32 %v524_v16, %v454_v54  ;;  %v485_v63 = vadd.f32 %v524_v16, %v462_v55 }
 0x103   :  { %490 = vst [vmem:[%s804_s4 + $0x20] sm:$0xff] %v474_v58  ;;  %498 = vst [vmem:[%s804_s4 + $0x60] sm:$0xff] %v482_v59  ;;  %v475_v0 = vadd.f32 %v524_v16, %v452_v60  ;;  %v483_v1 = vadd.f32 %v524_v16, %v460_v61 }
 0x104   :  { %493 = vst [vmem:[%s804_s4 + $0x38] sm:$0xff] %v477_v62  ;;  %501 = vst [vmem:[%s804_s4 + $0x78] sm:$0xff] %v485_v63 }
 0x105   :  { %491 = vst [vmem:[%s804_s4 + $0x28] sm:$0xff] %v475_v0  ;;  %499 = vst [vmem:[%s804_s4 + $0x68] sm:$0xff] %v483_v1 }

// kernel: gcn_forward.2
= control target key start
LH: loop header
LB: loop body
LE: loop exit
PB: predicated region body
PF: predicated region fallthrough
CT: control target
= control target key end

     0   :  { %v995_v1 = vmov 0   ;;  %s1275_s1 = inlined_call_operand.vmem [shape: bf16[128,128], index: 1, kind: input, shape index: {}]   ;;  %s1276_s0 = inlined_call_operand.vmem [shape: s8[128,128], index: 0, kind: input, shape index: {}]   ;;  %s1277_s2 = inlined_call_operand.vmem [shape: f32[128,1], index: 2, kind: input, shape index: {}]   ;;  %s1278_s4 = inlined_call_operand.vmem [shape: bf16[128,128], index: 4, kind: input, shape index: {}]   ;;  %s1279_s3 = inlined_call_operand.vmem [shape: f32[1,128], index: 3, kind: input, shape index: {}]   ;;  %s1280_s5 = inlined_call_operand.vmem [shape: bf16[128,128], index: 5, kind: output, shape index: {}]  }
   0x1   :  { %v979_v0 = vld [vmem:[%s1275_s1] sm:$0xff]   ;;  %977 = vset.pattern.permute.xlu0 %v995_v1  ;;  %978 = vset.pattern.permute.xlu1 %v995_v1  ;;  %v980_v2 = vld [vmem:[%s1275_s1 + $0x8] sm:$0xff]   ;;  %v981_v3 = vld [vmem:[%s1275_s1 + $0x10] sm:$0xff]  }
   0x2   :  { %912 = vmatprep.subr.bf16.mxu0 %v979_v0  ;;  %v982_v4 = vld [vmem:[%s1275_s1 + $0x18] sm:$0xff]   ;;  %v41_v5 = vld [vmem:[%s1276_s0] sm:$0x3]  ;;  %v42_v6 = vld [vmem:[%s1276_s0 + $0x2] sm:$0x3] }
   0x3   :  { %913 = vmatpush3.bf16.msra.mxu0 %v979_v0  ;;  %v57_v7 = vunpack.c.l.s8.bf16 %v41_v5  ;;  %v58_v8 = vunpack.c.l.s8.bf16 %v42_v6  ;;  %v983_v10 = vld [vmem:[%s1275_s1 + $0x20] sm:$0xff]   ;;  %v340_v12 = vld [vmem:[%s1277_s2 + $0x10] sm:$0xff]  ;;  %v339_v13 = vld [vmem:[%s1277_s2 + $0x8] sm:$0xff] }
   0x4   :  { %914 = vmatprep.subr.bf16.mxu0 %v980_v2  ;;  %v338_v11 = vld [vmem:[%s1277_s2] sm:$0xff]  ;;  %382 = vperm.xlu1 %978, %v340_v12   ;;  %v341_v14 = vld [vmem:[%s1277_s2 + $0x18] sm:$0xff]  ;;  %v984_v15 = vld [vmem:[%s1275_s1 + $0x28] sm:$0xff]  }
   0x5   :  { %v776_v9 = vcombine.low %v57_v7, %v58_v8  ;;  %372 = vperm.xlu0 %977, %v338_v11   ;;  %v342_v16 = vld [vmem:[%s1277_s2 + $0x20] sm:$0xff]  ;;  %v343_v17 = vld [vmem:[%s1277_s2 + $0x28] sm:$0xff]  ;;  %v985_v18 = vld [vmem:[%s1275_s1 + $0x30] sm:$0xff]  }
   0x6   :  { %v43_v19 = vld [vmem:[%s1276_s0 + $0x4] sm:$0x3]  ;;  %v44_v20 = vld [vmem:[%s1276_s0 + $0x6] sm:$0x3]  ;;  %v344_v21 = vld [vmem:[%s1277_s2 + $0x30] sm:$0xff] }
   0x7   :  { %915 = vmatpush3.bf16.msra.mxu0 %v980_v2  ;;  %928 = vmatprep.mubr.bf16.mxu0 %v776_v9  ;;  %v345_v22 = vld [vmem:[%s1277_s2 + $0x38] sm:$0xff]  ;;  %v45_v24 = vld [vmem:[%s1276_s0 + $0x8] sm:$0x3]  ;;  %v46_v25 = vld [vmem:[%s1276_s0 + $0xa] sm:$0x3]  ;;  %v59_v30 = vunpack.c.l.s8.bf16 %v43_v19  ;;  %v60_v31 = vunpack.c.l.s8.bf16 %v44_v20 }
   0x8   :  { %916 = vmatprep.subr.bf16.mxu0 %v981_v3  ;;  %387 = vperm.xlu1 %978, %v341_v14   ;;  %v986_v23 = vld [vmem:[%s1275_s1 + $0x38] sm:$0xff]   ;;  %v987_v26 = vld [vmem:[%s1278_s4] sm:$0xff]   ;;  %v347_v28 = vld [vmem:[%s1277_s2 + $0x48] sm:$0xff]  ;;  %v61_v32 = vunpack.c.l.s8.bf16 %v45_v24  ;;  %v62_v33 = vunpack.c.l.s8.bf16 %v46_v25 }
   0x9   :  { %377 = vperm.xlu0 %977, %v339_v13   ;;  %944 = vmatprep.subr.bf16.mxu1 %v987_v26  ;;  %v346_v27 = vld [vmem:[%s1277_s2 + $0x40] sm:$0xff]  ;;  %v988_v29 = vld [vmem:[%s1278_s4 + $0x8] sm:$0xff]   ;;  %v989_v34 = vld [vmem:[%s1278_s4 + $0x10] sm:$0xff]   ;;  %v777_v35 = vcombine.low %v59_v30, %v60_v31 }
   0xa   :  { %945 = vmatpush3.bf16.msra.mxu1 %v987_v26  ;;  %v778_v36 = vcombine.low %v61_v32, %v62_v33  ;;  %v47_v37 = vld [vmem:[%s1276_s0 + $0xc] sm:$0x3]  ;;  %v48_v38 = vld [vmem:[%s1276_s0 + $0xe] sm:$0x3]  ;;  %v348_v39 = vld [vmem:[%s1277_s2 + $0x50] sm:$0xff] }
   0xb   :  { %917 = vmatpush3.bf16.msra.mxu0 %v981_v3  ;;  %946 = vmatprep.subr.bf16.mxu1 %v988_v29  ;;  %v49_v40 = vld [vmem:[%s1276_s0 + $0x10] sm:$0x3]  ;;  %v50_v41 = vld [vmem:[%s1276_s0 + $0x12] sm:$0x3]  ;;  %v349_v42 = vld [vmem:[%s1277_s2 + $0x58] sm:$0xff]  ;;  %v63_v43 = vunpack.c.l.s8.bf16 %v47_v37  ;;  %v64_v44 = vunpack.c.l.s8.bf16 %v48_v38 }
   0xc   :  { %918 = vmatprep.subr.bf16.mxu0 %v982_v4  ;;  %397 = vperm.xlu1 %978, %v343_v17   ;;  %v990_v45 = vld [vmem:[%s1278_s4 + $0x18] sm:$0xff]   ;;  %v65_v46 = vunpack.c.l.s8.bf16 %v49_v40  ;;  %v66_v47 = vunpack.c.l.s8.bf16 %v50_v41  ;;  %v350_v48 = vld [vmem:[%s1277_s2 + $0x60] sm:$0xff]  ;;  %v351_v49 = vld [vmem:[%s1277_s2 + $0x68] sm:$0xff] }
   0xd   :  { %392 = vperm.xlu0 %977, %v342_v16   ;;  %v779_v50 = vcombine.low %v63_v43, %v64_v44  ;;  %v991_v51 = vld [vmem:[%s1278_s4 + $0x20] sm:$0xff]   ;;  %v51_v53 = vld [vmem:[%s1276_s0 + $0x14] sm:$0x3]  ;;  %v52_v54 = vld [vmem:[%s1276_s0 + $0x16] sm:$0x3] }
   0xe   :  { %947 = vmatpush3.bf16.msra.mxu1 %v988_v29  ;;  %v780_v52 = vcombine.low %v65_v46, %v66_v47  ;;  %v352_v55 = vld [vmem:[%s1277_s2 + $0x70] sm:$0xff]  ;;  %v53_v56 = vld [vmem:[%s1276_s0 + $0x18] sm:$0x3]  ;;  %v54_v57 = vld [vmem:[%s1276_s0 + $0x1a] sm:$0x3]  ;;  %v67_v59 = vunpack.c.l.s8.bf16 %v51_v53  ;;  %v68_v60 = vunpack.c.l.s8.bf16 %v52_v54 }
   0xf   :  { %919 = vmatpush3.bf16.msra.mxu0 %v982_v4  ;;  %948 = vmatprep.subr.bf16.mxu1 %v989_v34  ;;  %v353_v58 = vld [vmem:[%s1277_s2 + $0x78] sm:$0xff]  ;;  %v69_v61 = vunpack.c.l.s8.bf16 %v53_v56  ;;  %v70_v62 = vunpack.c.l.s8.bf16 %v54_v57  ;;  %v992_v6 = vld [vmem:[%s1278_s4 + $0x28] sm:$0xff]   ;;  %v993_v7 = vld [vmem:[%s1278_s4 + $0x30] sm:$0xff]  }
  0x10   :  { %920 = vmatprep.subr.bf16.mxu0 %v983_v10  ;;  %407 = vperm.xlu1 %978, %v345_v22   ;;  %v781_v63 = vcombine.low %v67_v59, %v68_v60  ;;  %v55_v1 = vld [vmem:[%s1276_s0 + $0x1c] sm:$0x3]  ;;  %v56_v2 = vld [vmem:[%s1276_s0 + $0x1e] sm:$0x3]  ;;  %v1187_v17 = vld [vmem:[%s1279_s3] ss:$0 sm:$0xff] }
  0x11   :  { %402 = vperm.xlu0 %977, %v344_v21   ;;  %v782_v0 = vcombine.low %v69_v61, %v70_v62  ;;  %v71_v3 = vunpack.c.l.s8.bf16 %v55_v1  ;;  %v72_v4 = vunpack.c.l.s8.bf16 %v56_v2  ;;  %v994_v8 = vld [vmem:[%s1278_s4 + $0x38] sm:$0xff]  }
  0x12   :  { %949 = vmatpush3.bf16.msra.mxu1 %v989_v34 }
  0x13   :  { %921 = vmatpush3.bf16.msra.mxu0 %v983_v10  ;;  %950 = vmatprep.subr.bf16.mxu1 %v990_v45  ;;  %v783_v5 = vcombine.low %v71_v3, %v72_v4 }
  0x14   :  { %922 = vmatprep.subr.bf16.mxu0 %v984_v15  ;;  %417 = vperm.xlu1 %978, %v347_v28  }
  0x15   :  { %412 = vperm.xlu0 %977, %v346_v27  }
  0x16   :  { %951 = vmatpush3.bf16.msra.mxu1 %v990_v45 }
  0x17   :  { %923 = vmatpush3.bf16.msra.mxu0 %v984_v15  ;;  %952 = vmatprep.subr.bf16.mxu1 %v991_v51 }
  0x18   :  { %924 = vmatprep.subr.bf16.mxu0 %v985_v18  ;;  %427 = vperm.xlu1 %978, %v349_v42  }
  0x19   :  { %422 = vperm.xlu0 %977, %v348_v39  }
  0x1a   :  { %953 = vmatpush3.bf16.msra.mxu1 %v991_v51 }
  0x1b   :  { %925 = vmatpush3.bf16.msra.mxu0 %v985_v18  ;;  %954 = vmatprep.subr.bf16.mxu1 %v992_v6 }
  0x1c   :  { %926 = vmatprep.subr.bf16.mxu0 %v986_v23  ;;  %437 = vperm.xlu1 %978, %v351_v49  }
  0x1d   :  { %432 = vperm.xlu0 %977, %v350_v48  }
  0x1e   :  { %955 = vmatpush3.bf16.msra.mxu1 %v992_v6 }
  0x1f   :  { %927 = vmatpush3.bf16.msra.mxu0 %v986_v23  ;;  %956 = vmatprep.subr.bf16.mxu1 %v993_v7 }
  0x20   :  { %447 = vperm.xlu1 %978, %v353_v58  }
  0x21   :  { %442 = vperm.xlu0 %977, %v352_v55  }
  0x22   :  { %929 = vmatmul.mubr.bf16.vlgmr.msra.gmra.mrb[0].mxu0 %v777_v35  ;;  %957 = vmatpush3.bf16.msra.mxu1 %v993_v7 }
  0x23   :  { %932 = vmatprep.mubr.bf16.mxu0 %v778_v36  ;;  %958 = vmatprep.subr.bf16.mxu1 %v994_v8 }
  0x26   :  { %959 = vmatpush3.bf16.msra.mxu1 %v994_v8 }
  0x2a   :  { %933 = vmatmul.mubr.bf16.gmra.mrb[4].mxu0 %v779_v50 }
  0x2b   :  { %936 = vmatprep.mubr.bf16.mxu0 %v780_v52 }
  0x32   :  { %937 = vmatmul.mubr.bf16.gmra.mrb[8].mxu0 %v781_v63 }
  0x33   :  { %940 = vmatprep.mubr.bf16.mxu0 %v782_v0 }
  0x3a   :  { %941 = vmatmul.mubr.bf16.gmra.mrb[12].mxu0 %v783_v5 }
  0x83   :  { %v1172_v10 = vpop.permute.xlu1 %382 }
  0x84   :  { %v1170_v9 = vpop.permute.xlu0 %372 }
  0x87   :  { %v1176_v12 = vpop.permute.xlu1 %387 }
  0x88   :  { %v1174_v11 = vpop.permute.xlu0 %377 }
  0x8b   :  { %v1180_v14 = vpop.permute.xlu1 %397 }
  0x8c   :  { %v1178_v13 = vpop.permute.xlu0 %392 }
  0x8f   :  { %v1190_v20 = vpop.permute.xlu1 %407 }
  0x90   :  { %v1182_v15 = vpop.permute.xlu0 %402 }
  0x93   :  { %v1201_v33 = vpop.permute.xlu1 %417 }
  0x94   :  { %v1198_v29 = vpop.permute.xlu0 %412 }
  0x97   :  { %v1212_v50 = vpop.permute.xlu1 %427 }
  0x98   :  { %v1207_v46 = vpop.permute.xlu0 %422 }
  0x9b   :  { %v1221_v3 = vpop.permute.xlu1 %437 }
  0x9c   :  { %v1216_v60 = vpop.permute.xlu0 %432 }
  0xf5   :  { %v930_v16 = vpop.f32.mrb[0].mxu0 }
  0xf6   :  { %v452_v18 = vmul.f32 %v930_v16, %v1172_v10  ;;  %v240_v19 = vpop.f32.mrb[1].mxu0 }
  0xf7   :  { %v450_v21 = vmul.f32 %v1170_v9, %v240_v19  ;;  %v931_v22 = vpop.f32.mrb[2].mxu0 }
  0xf8   :  { %v475_v23 = vadd.f32 %v1187_v17, %v452_v18  ;;  %v453_v24 = vmul.f32 %v931_v22, %v1176_v12  ;;  %v243_v25 = vpop.f32.mrb[3].mxu0  ;;  %v1227_v18 = vpop.permute.xlu0 %442 }
  0xf9   :  { %v451_v26 = vmul.f32 %v1174_v11, %v243_v25  ;;  %v473_v27 = vadd.f32 %v1187_v17, %v450_v21 }
  0xfa   :  { %v476_v28 = vadd.f32 %v1187_v17, %v453_v24  ;;  %v491_v31 = vmax.f32 %v475_v23, 0.0 }
  0xfb   :  { %v474_v30 = vadd.f32 %v1187_v17, %v451_v26  ;;  %v489_v35 = vmax.f32 %v473_v27, 0.0  ;;  %v448_v26 = vpop.permute.xlu1 %447 }
  0xfc   :  { %v492_v32 = vmax.f32 %v476_v28, 0.0 }
  0xfd   :  { %v934_v34 = vpop.f32.mrb[4].mxu0  ;;  %v490_v36 = vmax.f32 %v474_v30, 0.0 }
  0xfe   :  { %v456_v37 = vmul.f32 %v934_v34, %v1182_v15  ;;  %v256_v38 = vpop.f32.mrb[5].mxu0  ;;  %v506_v39 = vpack.c.bf16 %v492_v32, %v491_v31 }
  0xff   :  { %v454_v40 = vmul.f32 %v1178_v13, %v256_v38  ;;  %v935_v41 = vpop.f32.mrb[6].mxu0  ;;  %v505_v42 = vpack.c.bf16 %v490_v36, %v489_v35 }
 0x100   :  { %v479_v43 = vadd.f32 %v1187_v17, %v456_v37  ;;  %v457_v44 = vmul.f32 %v935_v41, %v1190_v20  ;;  %v259_v45 = vpop.f32.mrb[7].mxu0 }
 0x101   :  { %v477_v47 = vadd.f32 %v1187_v17, %v454_v40  ;;  %v455_v48 = vmul.f32 %v1180_v14, %v259_v45  ;;  %960 = vmatprep.mubr.bf16.mxu1 %v505_v42 }
 0x102   :  { %v480_v49 = vadd.f32 %v1187_v17, %v457_v44  ;;  %961 = vmatmul.mubr.bf16.vlgmr.msra.gmra.mrb[0].mxu1 %v506_v39  ;;  %v495_v52 = vmax.f32 %v479_v43, 0.0 }
 0x103   :  { %v478_v51 = vadd.f32 %v1187_v17, %v455_v48  ;;  %v493_v54 = vmax.f32 %v477_v47, 0.0 }
 0x104   :  { %v496_v53 = vmax.f32 %v480_v49, 0.0 }
 0x105   :  { %v494_v55 = vmax.f32 %v478_v51, 0.0  ;;  %v938_v56 = vpop.f32.mrb[8].mxu0 }
 0x106   :  { %v460_v57 = vmul.f32 %v938_v56, %v1207_v46  ;;  %v272_v58 = vpop.f32.mrb[9].mxu0  ;;  %v508_v59 = vpack.c.bf16 %v496_v53, %v495_v52 }
 0x107   :  { %v458_v61 = vmul.f32 %v1198_v29, %v272_v58  ;;  %v939_v62 = vpop.f32.mrb[10].mxu0  ;;  %v507_v63 = vpack.c.bf16 %v494_v55, %v493_v54 }
 0x108   :  { %v483_v0 = vadd.f32 %v1187_v17, %v460_v57  ;;  %v461_v1 = vmul.f32 %v939_v62, %v1212_v50  ;;  %v275_v2 = vpop.f32.mrb[11].mxu0 }
 0x109   :  { %v481_v4 = vadd.f32 %v1187_v17, %v458_v61  ;;  %v459_v5 = vmul.f32 %v1201_v33, %v275_v2  ;;  %964 = vmatprep.mubr.bf16.mxu1 %v507_v63 }
 0x10a   :  { %v484_v6 = vadd.f32 %v1187_v17, %v461_v1  ;;  %965 = vmatmul.mubr.bf16.gmra.mrb[4].mxu1 %v508_v59  ;;  %v499_v8 = vmax.f32 %v483_v0, 0.0 }
 0x10b   :  { %v482_v7 = vadd.f32 %v1187_v17, %v459_v5  ;;  %v497_v19 = vmax.f32 %v481_v4, 0.0 }
 0x10c   :  { %v500_v16 = vmax.f32 %v484_v6, 0.0 }
 0x10d   :  { %v498_v21 = vmax.f32 %v482_v7, 0.0  ;;  %v942_v22 = vpop.f32.mrb[12].mxu0 }
 0x10e   :  { %v464_v23 = vmul.f32 %v942_v22, %v1227_v18  ;;  %v288_v24 = vpop.f32.mrb[13].mxu0  ;;  %v510_v25 = vpack.c.bf16 %v500_v16, %v499_v8 }
 0x10f   :  { %v462_v27 = vmul.f32 %v1216_v60, %v288_v24  ;;  %v943_v28 = vpop.f32.mrb[14].mxu0  ;;  %v509_v30 = vpack.c.bf16 %v498_v21, %v497_v19 }
 0x110   :  { %v487_v31 = vadd.f32 %v1187_v17, %v464_v23  ;;  %v465_v32 = vmul.f32 %v943_v28, %v448_v26  ;;  %v291_v34 = vpop.f32.mrb[15].mxu0 }
 0x111   :  { %v485_v35 = vadd.f32 %v1187_v17, %v462_v27  ;;  %v463_v36 = vmul.f32 %v1221_v3, %v291_v34  ;;  %968 = vmatprep.mubr.bf16.mxu1 %v509_v30 }
 0x112   :  { %v488_v37 = vadd.f32 %v1187_v17, %v465_v32  ;;  %969 = vmatmul.mubr.bf16.gmra.mrb[8].mxu1 %v510_v25  ;;  %v503_v39 = vmax.f32 %v487_v31, 0.0 }
 0x113   :  { %v486_v38 = vadd.f32 %v1187_v17, %v463_v36  ;;  %v501_v41 = vmax.f32 %v485_v35, 0.0 }
 0x114   :  { %v504_v40 = vmax.f32 %v488_v37, 0.0 }
 0x115   :  { %v502_v42 = vmax.f32 %v486_v38, 0.0 }
 0x116   :  { %v512_v43 = vpack.c.bf16 %v504_v40, %v503_v39 }
 0x117   :  { %v511_v44 = vpack.c.bf16 %v502_v42, %v501_v41 }
 0x119   :  { %972 = vmatprep.mubr.bf16.mxu1 %v511_v44 }
 0x11a   :  { %973 = vmatmul.mubr.bf16.gmra.mrb[12].mxu1 %v512_v43 }
 0x1d5   :  { %v962_v45 = vpop.f32.mrb[0].mxu1 }
 0x1d6   :  { %v611_v47 = vpop.f32.mrb[1].mxu1  ;;  %v676_v49 = vmul.f32 %v962_v45, %v1172_v10 }
 0x1d7   :  { %v963_v48 = vpop.f32.mrb[2].mxu1  ;;  %v674_v53 = vmul.f32 %v611_v47, %v1170_v9 }
 0x1d8   :  { %v677_v51 = vmul.f32 %v963_v48, %v1176_v12  ;;  %v614_v52 = vpop.f32.mrb[3].mxu1 }
 0x1d9   :  { %v675_v17 = vmul.f32 %v614_v52, %v1174_v11 }
 0x1da   :  { %v841_v54 = vpack.c.bf16 %v677_v51, %v676_v49 }
 0x1db   :  { %v836_v55 = vpack.c.bf16 %v675_v17, %v674_v53 }
 0x1dc   :  { %873 = vst [vmem:[%s1280_s5 + $0x8] sm:$0xff] %v841_v54  }
 0x1dd   :  { %837 = vst [vmem:[%s1280_s5] sm:$0xff] %v836_v55   ;;  %v966_v56 = vpop.f32.mrb[4].mxu1 }
 0x1de   :  { %v627_v57 = vpop.f32.mrb[5].mxu1  ;;  %v680_v12 = vmul.f32 %v966_v56, %v1182_v15 }
 0x1df   :  { %v967_v10 = vpop.f32.mrb[6].mxu1  ;;  %v678_v11 = vmul.f32 %v627_v57, %v1178_v13 }
 0x1e0   :  { %v681_v58 = vmul.f32 %v967_v10, %v1190_v20  ;;  %v630_v9 = vpop.f32.mrb[7].mxu1 }
 0x1e1   :  { %v679_v59 = vmul.f32 %v630_v9, %v1180_v14 }
 0x1e2   :  { %v851_v61 = vpack.c.bf16 %v681_v58, %v680_v12 }
 0x1e3   :  { %v846_v62 = vpack.c.bf16 %v679_v59, %v678_v11 }
 0x1e4   :  { %875 = vst [vmem:[%s1280_s5 + $0x18] sm:$0xff] %v851_v61  }
 0x1e5   :  { %874 = vst [vmem:[%s1280_s5 + $0x10] sm:$0xff] %v846_v62   ;;  %v970_v63 = vpop.f32.mrb[8].mxu1 }
 0x1e6   :  { %v643_v0 = vpop.f32.mrb[9].mxu1  ;;  %v684_v20 = vmul.f32 %v970_v63, %v1207_v46 }
 0x1e7   :  { %v971_v15 = vpop.f32.mrb[10].mxu1  ;;  %v682_v14 = vmul.f32 %v643_v0, %v1198_v29 }
 0x1e8   :  { %v685_v1 = vmul.f32 %v971_v15, %v1212_v50  ;;  %v646_v13 = vpop.f32.mrb[11].mxu1 }
 0x1e9   :  { %v683_v2 = vmul.f32 %v646_v13, %v1201_v33 }
 0x1ea   :  { %v861_v4 = vpack.c.bf16 %v685_v1, %v684_v20 }
 0x1eb   :  { %v856_v5 = vpack.c.bf16 %v683_v2, %v682_v14 }
 0x1ec   :  { %877 = vst [vmem:[%s1280_s5 + $0x28] sm:$0xff] %v861_v4  }
 0x1ed   :  { %876 = vst [vmem:[%s1280_s5 + $0x20] sm:$0xff] %v856_v5   ;;  %v974_v6 = vpop.f32.mrb[12].mxu1 }
 0x1ee   :  { %v659_v7 = vpop.f32.mrb[13].mxu1  ;;  %v688_v50 = vmul.f32 %v974_v6, %v1227_v18 }
 0x1ef   :  { %v975_v46 = vpop.f32.mrb[14].mxu1  ;;  %v686_v29 = vmul.f32 %v659_v7, %v1216_v60 }
 0x1f0   :  { %v689_v8 = vmul.f32 %v975_v46, %v448_v26  ;;  %v662_v16 = vpop.f32.mrb[15].mxu1 }
 0x1f1   :  { %v687_v33 = vmul.f32 %v662_v16, %v1221_v3 }
 0x1f2   :  { %v871_v19 = vpack.c.bf16 %v689_v8, %v688_v50 }
 0x1f3   :  { %v866_v21 = vpack.c.bf16 %v687_v33, %v686_v29 }
 0x1f4   :  { %879 = vst [vmem:[%s1280_s5 + $0x38] sm:$0xff] %v871_v19  }
 0x1f5   :  { %878 = vst [vmem:[%s1280_s5 + $0x30] sm:$0xff] %v866_v21  }

</bundles_post_ra>
